<compile_context>
chip_gen: v5e
topology: v5e:2x2
jax: 0.10.0
libtpu: 0.0.40
codegen_flags: <defaults>
</compile_context>

<pallas_src>
import jax
import jax.numpy as jnp
from jax.experimental import pallas as pl
from jax.experimental.pallas import tpu as pltpu


# ---------------------------------------------------------------------------
# Kernel
# ---------------------------------------------------------------------------
def ffnet1hidden_kernel(x_ref, w1_ref, b1_ref, w2_ref, b2_ref, o_ref):
    # fc1: cast the f32 activation tile to bf16 on the VPU (hidden under DMA),
    # then (B, D_in) bf16 @ (D_in, H) bf16 -> f32 accumulate on the MXU.
    x_bf = x_ref[...].astype(jnp.bfloat16)
    h = jnp.dot(x_bf, w1_ref[...], preferred_element_type=jnp.float32)
    h = jnp.tanh(h + b1_ref[...])                      # (B, H) f32, bias + tanh (VPU/EUP)
    # fc2: elementwise multiply with the (1, H) weight row (VPU) + lane reduce (XLU).
    y = jnp.sum(h * w2_ref[...], axis=-1)              # (B,) f32
    y = jax.nn.sigmoid(y + b2_ref[0])                  # scalar bias from SMEM
    # Lane-dense store: batch on lanes.
    o_ref[...] = y[None, :].astype(o_ref.dtype)        # (1, B_tile)


# ---------------------------------------------------------------------------
# Parameter preparation (one-time, hoisted out of the forward path)
# ---------------------------------------------------------------------------
def prepare_params(w1, b1, w2, b2):
    """Convert nn.Linear-layout params to kernel layout once."""
    w1_t = jnp.asarray(w1, jnp.float32).T.astype(jnp.bfloat16)   # (D_in, H) bf16 MXU operand
    b1_r = jnp.asarray(b1, jnp.float32).reshape(1, -1)           # (1, H)
    w2_r = jnp.asarray(w2, jnp.float32).reshape(1, -1)           # (1, H) row for VPU fc2
    b2_s = jnp.asarray(b2, jnp.float32).reshape(-1)              # (1,) -> SMEM scalar
    return w1_t, b1_r, w2_r, b2_s


# ---------------------------------------------------------------------------
# Tile sizing
# ---------------------------------------------------------------------------
_SMALL_BATCH = 1024                    # below this, a single grid-free call is cheapest
_VMEM_STREAM_BUDGET = 12 * 1024 * 1024  # per-step streaming footprint; fits v5e's 16 MiB default
_VMEM_LIMIT_BYTES = 32 * 1024 * 1024    # explicit scoped-VMEM limit (<= v7x 64 MiB physical)
_MAX_BATCH_TILE = 4096                  # step overhead fully amortized well before this


def _round_up(x, m):
    return ((x + m - 1) // m) * m


def _round_down(x, m):
    return (x // m) * m


def _choose_batch_tile(B, D_in, H):
    d_pad = _round_up(max(D_in, 1), 128)
    h_pad = _round_up(max(H, 1), 128)
    # Per-batch-row VMEM bytes: double-buffered f32 x tile + f32 hidden temp
    # + double-buffered f32 lane-dense output row.
    per_row = 2 * d_pad * 4 + h_pad * 4 + 2 * 4
    tile = _VMEM_STREAM_BUDGET // per_row
    tile = min(tile, _MAX_BATCH_TILE)
    # Keep the grid at >= 2 steps so the "parallel" axis can shard across v7x's 2 TCs.
    tile = min(tile, B // 2)
    # Lane-dense output blocks require the tile to be a multiple of 128.
    tile = max(_round_down(tile, 128), 128)
    return tile


# ---------------------------------------------------------------------------
# Forward
# ---------------------------------------------------------------------------
def ffnet1hidden_forward(x, params, *, batch_tile=None):
    """x: (B, D_in) f32. Returns (B, 1) f32, matching FFNet1Hidden.forward."""
    w1_t, b1_r, w2_r, b2_s = params
    B, D_in = x.shape
    H = w1_t.shape[1]
    x = x.astype(jnp.float32)

    vmem = pltpu.MemorySpace.VMEM
    smem = pltpu.MemorySpace.SMEM

    if B <= _SMALL_BATCH:
        # Small batch: single shot, no grid / pipeline bookkeeping.
        out = pl.pallas_call(
            ffnet1hidden_kernel,
            out_shape=jax.ShapeDtypeStruct((1, B), jnp.float32),
            in_specs=[
                pl.BlockSpec(memory_space=vmem),
                pl.BlockSpec(memory_space=vmem),
                pl.BlockSpec(memory_space=vmem),
                pl.BlockSpec(memory_space=vmem),
                pl.BlockSpec(memory_space=smem),
            ],
            out_specs=pl.BlockSpec(memory_space=vmem),
            compiler_params=pltpu.CompilerParams(
                vmem_limit_bytes=_VMEM_LIMIT_BYTES,
            ),
        )(x, w1_t, b1_r, w2_r, b2_s)
        return out.reshape(B, 1)

    # Batch-tiled path: weights/biases stay VMEM-resident, only activations stream.
    tile = _choose_batch_tile(B, D_in, H) if batch_tile is None else max(
        _round_down(int(batch_tile), 128), 128)
    num_tiles = pl.cdiv(B, tile)
    B_pad = num_tiles * tile
    x_in = x if B_pad == B else jnp.pad(x, ((0, B_pad - B), (0, 0)))

    out = pl.pallas_call(
        ffnet1hidden_kernel,
        out_shape=jax.ShapeDtypeStruct((1, B_pad), jnp.float32),
        grid=(num_tiles,),
        in_specs=[
            pl.BlockSpec((tile, D_in), lambda i: (i, 0)),   # x tile (f32, cast in-kernel)
            pl.BlockSpec((D_in, H), lambda i: (0, 0)),      # w1 resident (bf16)
            pl.BlockSpec((1, H), lambda i: (0, 0)),         # b1 resident
            pl.BlockSpec((1, H), lambda i: (0, 0)),         # w2 resident
            pl.BlockSpec(memory_space=smem),                # b2 scalar
        ],
        out_specs=pl.BlockSpec((1, tile), lambda i: (0, i)),
        compiler_params=pltpu.CompilerParams(
            dimension_semantics=("parallel",),              # megacore sharding on v7x
            vmem_limit_bytes=_VMEM_LIMIT_BYTES,
        ),
    )(x_in, w1_t, b1_r, w2_r, b2_s)

    # (1, B_pad) -> (B, 1): drop padded rows, free reshape.
    return out[0, :B].reshape(B, 1)


# ---------------------------------------------------------------------------
# Init / reference
# ---------------------------------------------------------------------------
def init_params(key, input_size, hidden_size):
    """Deterministic init mimicking nn.Linear default (uniform +/- 1/sqrt(fan_in))."""
    k1, k2, k3, k4 = jax.random.split(key, 4)
    bound1 = 1.0 / (input_size ** 0.5)
    bound2 = 1.0 / (hidden_size ** 0.5)
    w1 = jax.random.uniform(k1, (hidden_size, input_size), jnp.float32, -bound1, bound1)
    b1 = jax.random.uniform(k2, (hidden_size,), jnp.float32, -bound1, bound1)
    w2 = jax.random.uniform(k3, (1, hidden_size), jnp.float32, -bound2, bound2)
    b2 = jax.random.uniform(k4, (1,), jnp.float32, -bound2, bound2)
    return w1, b1, w2, b2


def reference_forward(x, w1, b1, w2, b2):
    # Mirror the kernel's bf16 MXU operands (f32 accumulate) so the comparison is tight.
    x_q = x.astype(jnp.bfloat16).astype(jnp.float32)
    w1_q = jnp.asarray(w1, jnp.float32).astype(jnp.bfloat16).astype(jnp.float32)
    h = jnp.tanh(x_q @ w1_q.T + b1)
    return jax.nn.sigmoid(h @ w2.T + b2)


# ---------------------------------------------------------------------------
# Self-test
# ---------------------------------------------------------------------------
if __name__ == "__main__":
    key = jax.random.PRNGKey(0)
    kx, kp, kx2 = jax.random.split(key, 3)

    input_size, hidden_size = 32, 64
    w1, b1, w2, b2 = init_params(kp, input_size, hidden_size)
    params = prepare_params(w1, b1, w2, b2)

    # Small-batch path (grid-free).
    batch = 8
    x = jax.random.normal(kx, (batch, input_size), jnp.float32)
    out = jax.block_until_ready(ffnet1hidden_forward(x, params))
    ref = reference_forward(x, w1, b1, w2, b2)
    assert out.shape == (batch, 1)
    assert jnp.allclose(out, ref, atol=1e-3, rtol=1e-3), float(jnp.max(jnp.abs(out - ref)))

    # Batch-tiled path: non-multiple batch exercises cdiv grid + wrapper padding,
    # auto-sized tile keeps >=2 grid steps for the parallel axis.
    big_batch = 2500
    x_big = jax.random.normal(kx2, (big_batch, input_size), jnp.float32)
    out_big = jax.block_until_ready(ffnet1hidden_forward(x_big, params))
    ref_big = reference_forward(x_big, w1, b1, w2, b2)
    assert out_big.shape == (big_batch, 1)
    assert jnp.allclose(out_big, ref_big, atol=1e-3, rtol=1e-3), float(
        jnp.max(jnp.abs(out_big - ref_big)))

    print("KERNEL_OK")
</pallas_src>

<mosaic_0001>
module attributes {stable_mosaic.version = 11 : i64} {
  func.func @ffnet1hidden_kernel(%arg0: memref<8x32xf32, #tpu.memory_space<vmem>>, %arg1: memref<32x64xbf16, #tpu.memory_space<vmem>>, %arg2: memref<1x64xf32, #tpu.memory_space<vmem>>, %arg3: memref<1x64xf32, #tpu.memory_space<vmem>>, %arg4: memref<1xf32, #tpu.memory_space<smem>>, %arg5: memref<1x8xf32, #tpu.memory_space<vmem>>) attributes {dimension_semantics = [], scalar_prefetch = 0 : i64, scratch_operands = 0 : i64, tpu.core_type = #tpu.core_type<tc>} {
    %c0 = arith.constant 0 : index
    %c0_0 = arith.constant 0 : index
    %0 = vector.load %arg0[%c0, %c0_0] : memref<8x32xf32, #tpu.memory_space<vmem>>, vector<8x32xf32>
    %1 = arith.truncf %0 : vector<8x32xf32> to vector<8x32xbf16>
    %c0_1 = arith.constant 0 : index
    %c0_2 = arith.constant 0 : index
    %2 = vector.load %arg1[%c0_1, %c0_2] : memref<32x64xbf16, #tpu.memory_space<vmem>>, vector<32x64xbf16>
    %cst = arith.constant dense<0.000000e+00> : vector<8x64xf32>
    %3 = tpu.matmul %1, %2, %cst {dimension_numbers = #tpu.dot_dimension_numbers<[1], [0], [0], [1], [0, 0, 1, 1], [], []>} : vector<8x32xbf16>, vector<32x64xbf16>, vector<8x64xf32> -> vector<8x64xf32>
    %c0_3 = arith.constant 0 : index
    %c0_4 = arith.constant 0 : index
    %4 = vector.load %arg2[%c0_3, %c0_4] : memref<1x64xf32, #tpu.memory_space<vmem>>, vector<1x64xf32>
    %5 = vector.broadcast %4 : vector<1x64xf32> to vector<8x64xf32>
    %6 = arith.addf %3, %5 : vector<8x64xf32>
    %7 = math.tanh %6 : vector<8x64xf32>
    %c0_5 = arith.constant 0 : index
    %c0_6 = arith.constant 0 : index
    %8 = vector.load %arg3[%c0_5, %c0_6] : memref<1x64xf32, #tpu.memory_space<vmem>>, vector<1x64xf32>
    %9 = vector.broadcast %8 : vector<1x64xf32> to vector<8x64xf32>
    %10 = arith.mulf %7, %9 : vector<8x64xf32>
    %cst_7 = arith.constant dense<0.000000e+00> : vector<8xf32>
    %11 = vector.multi_reduction <add>, %10, %cst_7 [1] : vector<8x64xf32> to vector<8xf32>
    %c0_8 = arith.constant 0 : index
    %12 = memref.load %arg4[%c0_8] : memref<1xf32, #tpu.memory_space<smem>>
    %13 = vector.broadcast %12 : f32 to vector<8xf32>
    %14 = arith.addf %11, %13 : vector<8xf32>
    %15 = arith.negf %14 : vector<8xf32>
    %16 = math.exp %15 : vector<8xf32>
    %cst_9 = arith.constant 1.000000e+00 : f32
    %17 = vector.broadcast %cst_9 : f32 to vector<8xf32>
    %18 = arith.addf %17, %16 : vector<8xf32>
    %19 = arith.divf %17, %18 : vector<8xf32>
    %20 = vector.shape_cast %19 : vector<8xf32> to vector<1x8xf32>
    %c0_10 = arith.constant 0 : index
    %c0_11 = arith.constant 0 : index
    %21 = vector.load %arg5[%c0_10, %c0_11] : memref<1x8xf32, #tpu.memory_space<vmem>>, vector<1x8xf32>
    tpu.vector_store %arg5[%c0_10, %c0_11], %20 {strides = array<i32>} : memref<1x8xf32, #tpu.memory_space<vmem>>, vector<1x8xf32>,
    return
  }
}

</mosaic_0001>

<bundles_post_ra>
// kernel: tpu_custom_call.1
= control target key start
LH: loop header
LB: loop body
LE: loop exit
PB: predicated region body
PF: predicated region fallthrough
CT: control target
= control target key end

     0   :  { %11 = vsyncpa [#allocation4], 0  ;;  %s305_s0 = inlined_call_operand.hbm [shape: f32[8,32], index: 0, kind: input, shape index: {}]   ;;  %s306_s1 = inlined_call_operand.hbm [shape: bf16[32,64], index: 1, kind: input, shape index: {}]   ;;  %s307_s2 = inlined_call_operand.vmem [shape: f32[1,64], index: 2, kind: input, shape index: {}]   ;;  %s308_s3 = inlined_call_operand.vmem [shape: f32[1,64], index: 3, kind: input, shape index: {}]   ;;  %s309_s4 = inlined_call_operand.<no memory space> [shape: f32[1], index: 4, kind: input, shape index: {}]   ;;  %s310_s5 = inlined_call_operand.hbm [shape: f32[1,8], index: 5, kind: output, shape index: {}]  }
   0x1   :  { %12 = vsyncpa [#allocation7], 0 }
   0x2   :  { %13 = vsyncpa [#allocation5], 0  ;;  %s19_s20 = sshll.u32 %s305_s0, 4  ;;  %s252_s21 = smov [#allocation3]   ;;  %s20_s20 = int_to_ptr.hbm [resolvable:$true] %s19_s20 }
   0x3   :  { %s21_s22 = sshll.u32 %s252_s21, 4  ;;  %s29_s25 = sshll.u32 %s306_s1, 4  ;;  %s22_s22 = int_to_ptr.vmem [resolvable:$true] %s21_s22  ;;  %s30_s25 = int_to_ptr.hbm [resolvable:$true] %s29_s25 }
   0x4   :  { %24 = dma.hbm_to_vmem [thread:$0]  %s20_s20, 128, %s22_s22, [#allocation4]  }
   0x5   :  { %s253_s26 = smov [#allocation6]   ;;  %s254_s28 = smov 64  }
   0x6   :  { %s31_s27 = sshll.u32 %s253_s26, 4  ;;  %s255_s29 = smov 4   ;;  %s32_s27 = int_to_ptr.vmem [resolvable:$true] %s31_s27 }
   0x7   :  { %37 = dma.hbm_to_vmem [thread:$0]  %s30_s25, 256, %s32_s27, [#allocation7], %s254_s28, %s254_s28, %s255_s29  }
   0x8   :  { %246 = dma.done.wait [#allocation4], 128  }
   0x9   :  { %247 = vsyncadd [#allocation4], 4294967168 }
   0xa   :  { %248 = dma.done.wait [#allocation7], 256  }
   0xb   :  { %249 = vsyncadd [#allocation7], 4294967040  ;;  %v160_v0 = vld [vmem:[#allocation6 + $0x8] sm:$0xff]  ;;  %v159_v1 = vld [vmem:[#allocation6] sm:$0xff]  ;;  %vm75_vm0 = vcmask 261120   ;;  %vm98_vm1 = vcmask 523264   ;;  %v103_v12 = vstv %s309_s4  ;;  %v125_v21 = vlaneseq }
   0xc   :  { %85 = vmatpush.bf16.msra.mxu0 %v160_v0  ;;  %v53_v2 = vld [vmem:[#allocation3] sm:$0xff]  ;;  %s138_s10 = sshll.u32 %s310_s5, 4  ;;  %vm129_vm6 = vcmask 57344   ;;  %s139_s10 = int_to_ptr.hbm [resolvable:$true] %s138_s10 }
   0xd   :  { %v54_v3 = vpack.c.bf16 %v53_v2, %v53_v2  ;;  %v166_v4 = vld [vmem:[%s307_s2] ss:$0 sm:$0xff]  ;;  %v126_v26 = vand.u32 127, %v125_v21  ;;  %s256_s2 = smov [#allocation8]  }
   0xe   :  { %v167_v7 = vld [vmem:[%s308_s3] ss:$0 sm:$0xff]  ;;  %s136_s3 = sshll.u32 %s256_s2, 4  ;;  %s137_s3 = int_to_ptr.vmem [resolvable:$true] %s136_s3 }
  0x10   :  { %86 = vmatpush.bf16.msra.mxu0 %v159_v1 }
  0x13   :  { %157 = vmatmul.msk.bf16.vlgmr.msra.gmra.mxu0 %vm75_vm0, %v54_v3 }
  0x90   :  { %v88_v5 = vpop.f32.mrf.mxu0 }
  0x91   :  { %v89_v6 = vadd.f32 %v166_v4, %v88_v5 }
  0x93   :  { %168 = vtanh.f32 %v89_v6 }
  0x98   :  { %v90_v8 = vpop.f32.mrf.mxu0 }
  0x99   :  { %v169_v9 = vpop.eup %168 }
  0x9a   :  { %v97_v10 = vmul.f32 %v169_v9, %v167_v7 }
  0x9c   :  { %v99_v11 = vsel %vm98_vm1, %v97_v10, 0.0 }
  0x9d   :  { %100 = vadd.xlane.f32.xlu0 %v99_v11 }
 0x110   :  { %v101_v13 = vpop.xlane.xlu0 %100 }
 0x111   :  { %v104_v14 = vadd.f32 %v103_v12, %v101_v13 }
 0x113   :  { %v158_v15 = vmul.f32 -1.442695, %v104_v14 }
 0x115   :  { %170 = vpow2.f32 %v158_v15 }
 0x11b   :  { %v171_v16 = vpop.eup %170 }
 0x11c   :  { %v108_v17 = vadd.f32 1.0, %v171_v16 }
 0x11e   :  { %172 = vrcp.f32 %v108_v17  ;;  %v120_v22 = vand.u32 2147483648, %v108_v17  ;;  %v118_v24 = vand.u32 2147483647, %v108_v17  ;;  %vm114_vm3 = vweird.f32 %v108_v17 }
 0x120   :  { %v121_v27 = vor.u32 1.1754944e-38, %v120_v22  ;;  %vm119_vm5 = vcmp.eq.f32.partialorder %v118_v24, 8.507059e+37 }
 0x124   :  { %v173_v18 = vpop.eup %172 }
 0x125   :  { %v110_v19 = vmul.f32 %v173_v18, %v108_v17  ;;  %vm115_vm2 = vweird.f32 %v173_v18 }
 0x126   :  { %vm116_vm4 = vmor %vm114_vm3, %vm115_vm2 }
 0x127   :  { %v111_v20 = vsub.f32 1.0, %v110_v19 }
 0x129   :  { %v112_v23 = vmul.f32 %v173_v18, %v111_v20 }
 0x12b   :  { %v113_v25 = vadd.f32 %v173_v18, %v112_v23 }
 0x12d   :  { %v117_v28 = vsel %vm116_vm4, %v173_v18, %v113_v25 }
 0x12e   :  { %v122_v29 = vsel %vm119_vm5, %v121_v27, %v117_v28 }
 0x12f   :  { %v127_v30 = vperm.slane %v122_v29, %v126_v26 }
 0x131   :  { %130 = vst.msk [vmem:[#allocation8] sm:$0x1] %vm129_vm6, %v127_v30 }
 0x132   :  { %141 = dma.vmem_to_hbm [thread:$0]  %s137_s3, 16, %s139_s10, [#allocation5]  }
 0x133   :  { %250 = dma.done.wait [#allocation5], 16  }
 0x134   :  { %251 = vsyncadd [#allocation5], 4294967280 }
 0x135   :  { %146 = vsyncpa [#allocation4], 1 }
 0x136   :  { %147 = vsyncpa [#allocation7], 1 }
 0x137   :  { %148 = vsyncpa [#allocation5], 1 }

</bundles_post_ra>
